<compile_context>
chip_gen: v6e
topology: v6e:2x2x1
jax: 0.10.0
libtpu: 0.0.40
codegen_flags: <defaults>
</compile_context>

<pallas_src>
import numpy as np
import jax
import jax.numpy as jnp
from jax.experimental import pallas as pl
from jax.experimental.pallas import tpu as pltpu


def _round_up(x, m):
    return ((x + m - 1) // m) * m


def make_positional_encoding(num_freqs=6, d_in=3, freq_factor=np.pi,
                             include_input=True, tile_n=4096):
    n_emb = 2 * num_freqs * d_in                      # e.g. 36
    d_out = n_emb + (d_in if include_input else 0)    # e.g. 39
    tile_n = max(128, _round_up(tile_n, 128))

    # Torch-module buffers, expanded to one scalar per embedding *row* of the
    # transposed slab (row k -> freq pair k // d_in, input dim k % d_in).
    freqs = freq_factor * (2.0 ** np.arange(num_freqs))          # (F,)
    freqs2 = np.repeat(freqs, 2)                                  # repeat_interleave(freqs, 2)
    phases = np.zeros(2 * num_freqs)
    phases[1::2] = np.pi * 0.5
    f_col = np.repeat(freqs2, d_in).reshape(-1, 1).astype(np.float32)   # (2F*d_in, 1)
    p_col = np.repeat(phases, d_in).reshape(-1, 1).astype(np.float32)   # (2F*d_in, 1)

    def kernel(f_ref, p_ref, x_ref, xt_ref, o_ref):
        # f_ref/p_ref: (2F*d_in, 1) constants (passed as operands, not captured)
        # x_ref : (tile, d_in)   rows-on-sublanes view (passthrough columns only)
        # xt_ref: (d_in, tile)   rows-on-lanes view (lane-dense compute)
        # o_ref : (tile, d_out)
        xt = xt_ref[...].astype(jnp.float32)                  # (d_in, tile)
        # Sublane tiling (cheap copies; not the old cross-lane jnp.tile):
        # row k of the slab is x[:, k % d_in] broadcast across all N lanes.
        slab = jnp.tile(xt, (2 * num_freqs, 1))                # (2F*d_in, tile)
        # ONE fully lane-dense fused sin over all frequency/phase rows.
        emb = jnp.sin(slab * f_ref[...] + p_ref[...])          # (2F*d_in, tile)
        # Single XLU transpose back to the row-major output orientation.
        emb_t = emb.T                                          # (tile, 2F*d_in)
        if include_input:
            # Two static slice-stores; no concatenate (no cross-lane merge).
            o_ref[:, :d_in] = x_ref[...].astype(o_ref.dtype)
            o_ref[:, d_in:] = emb_t.astype(o_ref.dtype)
        else:
            o_ref[...] = emb_t.astype(o_ref.dtype)

    def apply(x):
        orig_shape = x.shape
        assert orig_shape[-1] == d_in, "last dim must equal d_in"
        xf = x.reshape(-1, d_in)
        n = xf.shape[0]
        if n == 0:
            return jnp.zeros((*orig_shape[:-1], d_out), x.dtype)

        # Lane-dense view of the input for the in-kernel compute: one cheap
        # XLA transpose (layout plumbing, ~2*d_in*itemsize bytes/row).
        xt = xf.T                                              # (d_in, n)

        # Tile: multiple of 128 (lane axis of the transposed block + dtype
        # sublane minimums); capped so the grid has >= 2 steps when possible
        # so both v7x TensorCores are used; large default amortizes the
        # ~0.35us/step pipeline overhead on v5e/v6e.
        tile = min(tile_n, _round_up(pl.cdiv(n, 2), 128))
        tile = max(tile, 128)
        grid = (pl.cdiv(n, tile),)

        itemsize = jnp.dtype(x.dtype).itemsize
        cost = pl.CostEstimate(
            flops=2 * n * n_emb,                 # mul + add per embed element
            transcendentals=n * n_emb,           # one sin per embed element
            bytes_accessed=n * (2 * d_in + d_out) * itemsize,
        )

        out = pl.pallas_call(
            kernel,
            out_shape=jax.ShapeDtypeStruct((n, d_out), x.dtype),
            grid=grid,
            in_specs=[
                pl.BlockSpec((n_emb, 1), lambda i: (0, 0)),    # freq constants
                pl.BlockSpec((n_emb, 1), lambda i: (0, 0)),    # phase constants
                pl.BlockSpec((tile, d_in), lambda i: (i, 0)),  # x  (rows on sublanes)
                pl.BlockSpec((d_in, tile), lambda i: (0, i)),  # x^T (rows on lanes)
            ],
            out_specs=pl.BlockSpec((tile, d_out), lambda i: (i, 0)),
            compiler_params=pltpu.CompilerParams(
                dimension_semantics=("parallel",),
                vmem_limit_bytes=48 * 1024 * 1024,
            ),
            cost_estimate=cost,
        )(jnp.asarray(f_col), jnp.asarray(p_col), xf, xt)

        # NOTE: boundary (non-divisible n) blocks compute sin over padded
        # garbage lanes, but those output rows are never written back.
        return out.reshape(*orig_shape[:-1], d_out)

    return apply


def _reference(x, num_freqs=6, d_in=3, freq_factor=np.pi, include_input=True):
    # Pure-numpy reference mirroring the torch forward (computed in f32).
    freqs = (freq_factor * 2.0 ** np.arange(num_freqs)).astype(np.float32)
    freqs2 = np.repeat(freqs, 2).reshape(1, -1, 1)                 # (1, 2F, 1)
    phases = np.zeros(2 * num_freqs, dtype=np.float32)
    phases[1::2] = np.float32(np.pi * 0.5)
    phases = phases.reshape(1, -1, 1)                              # (1, 2F, 1)
    orig_shape = x.shape
    xf = x.reshape(-1, d_in).astype(np.float32)
    embed = np.sin(xf[:, None, :] * freqs2 + phases)               # (N, 2F, d_in)
    embed = embed.reshape(xf.shape[0], -1)
    if include_input:
        embed = np.concatenate([xf, embed], axis=-1)
    d_out = embed.shape[-1]
    return embed.reshape(*orig_shape[:-1], d_out)


if __name__ == "__main__":
    num_freqs, d_in = 6, 3
    d_out = 2 * num_freqs * d_in + d_in

    # Case 1: small input consistent with the module (D1=2, D2=8, d_in=3).
    pe = make_positional_encoding(num_freqs=num_freqs, d_in=d_in)
    x = jax.random.normal(jax.random.PRNGKey(0), (2, 8, d_in), dtype=jnp.float32)
    out = jax.block_until_ready(pe(x))
    ref = _reference(np.asarray(x), num_freqs=num_freqs, d_in=d_in)
    assert out.shape == (2, 8, d_out)
    np.testing.assert_allclose(np.asarray(out), ref, rtol=2e-4, atol=2e-4)

    # Case 2: multi-tile grid with a non-divisible boundary block
    # (exercises the padded-lane / clipped-writeback path).
    pe_small_tile = make_positional_encoding(num_freqs=num_freqs, d_in=d_in,
                                             tile_n=128)
    x2 = jax.random.normal(jax.random.PRNGKey(1), (5, 100, d_in),
                           dtype=jnp.float32)
    out2 = jax.block_until_ready(pe_small_tile(x2))
    ref2 = _reference(np.asarray(x2), num_freqs=num_freqs, d_in=d_in)
    np.testing.assert_allclose(np.asarray(out2), ref2, rtol=2e-4, atol=2e-4)

    print("KERNEL_OK")
</pallas_src>

<mosaic_0001>
module attributes {stable_mosaic.version = 11 : i64} {
  func.func @kernel(%arg0: i32, %arg1: memref<36x1xf32, #tpu.memory_space<vmem>>, %arg2: memref<36x1xf32, #tpu.memory_space<vmem>>, %arg3: memref<128x3xf32, #tpu.memory_space<vmem>>, %arg4: memref<3x128xf32, #tpu.memory_space<vmem>>, %arg5: memref<128x39xf32, #tpu.memory_space<vmem>>) attributes {dimension_semantics = [#tpu.dimension_semantics<parallel>], iteration_bounds = array<i64: 1>, scalar_prefetch = 0 : i64, scratch_operands = 0 : i64, tpu.core_type = #tpu.core_type<tc>, window_params = [{pipeline_mode = #tpu.pipeline_mode<synchronous>, transform_indices = @transform_0, window_bounds = array<i64: 36, 1>}, {pipeline_mode = #tpu.pipeline_mode<synchronous>, transform_indices = @transform_1, window_bounds = array<i64: 36, 1>}, {transform_indices = @transform_2, window_bounds = array<i64: 128, 3>}, {transform_indices = @transform_3, window_bounds = array<i64: 3, 128>}, {transform_indices = @transform_4, window_bounds = array<i64: 128, 39>}]} {
    %c0 = arith.constant 0 : index
    %c0_0 = arith.constant 0 : index
    %0 = vector.load %arg4[%c0, %c0_0] : memref<3x128xf32, #tpu.memory_space<vmem>>, vector<3x128xf32>
    %1 = tpu.concatenate %0, %0, %0, %0, %0, %0, %0, %0, %0, %0, %0, %0 in 0 : vector<3x128xf32>, vector<3x128xf32>, vector<3x128xf32>, vector<3x128xf32>, vector<3x128xf32>, vector<3x128xf32>, vector<3x128xf32>, vector<3x128xf32>, vector<3x128xf32>, vector<3x128xf32>, vector<3x128xf32>, vector<3x128xf32> -> vector<36x128xf32>
    %c0_1 = arith.constant 0 : index
    %c0_2 = arith.constant 0 : index
    %2 = vector.load %arg1[%c0_1, %c0_2] : memref<36x1xf32, #tpu.memory_space<vmem>>, vector<36x1xf32>
    %3 = vector.broadcast %2 : vector<36x1xf32> to vector<36x128xf32>
    %4 = arith.mulf %1, %3 : vector<36x128xf32>
    %c0_3 = arith.constant 0 : index
    %c0_4 = arith.constant 0 : index
    %5 = vector.load %arg2[%c0_3, %c0_4] : memref<36x1xf32, #tpu.memory_space<vmem>>, vector<36x1xf32>
    %6 = vector.broadcast %5 : vector<36x1xf32> to vector<36x128xf32>
    %7 = arith.addf %4, %6 : vector<36x128xf32>
    %8 = math.sin %7 : vector<36x128xf32>
    %9 = tpu.transpose %8, [1, 0] : vector<36x128xf32> -> vector<128x36xf32>
    %c0_5 = arith.constant 0 : index
    %c0_6 = arith.constant 0 : index
    %10 = vector.load %arg3[%c0_5, %c0_6] : memref<128x3xf32, #tpu.memory_space<vmem>>, vector<128x3xf32>
    %c0_7 = arith.constant 0 : index
    %c0_8 = arith.constant 0 : index
    %11 = vector.load %arg5[%c0_7, %c0_8] : memref<128x39xf32, #tpu.memory_space<vmem>>, vector<128x3xf32>
    tpu.vector_store %arg5[%c0_7, %c0_8], %10 {strides = array<i32>} : memref<128x39xf32, #tpu.memory_space<vmem>>, vector<128x3xf32>,
    %c0_9 = arith.constant 0 : index
    %c3 = arith.constant 3 : index
    %12 = vector.load %arg5[%c0_9, %c3] : memref<128x39xf32, #tpu.memory_space<vmem>>, vector<128x36xf32>
    tpu.vector_store %arg5[%c0_9, %c3], %9 {strides = array<i32>} : memref<128x39xf32, #tpu.memory_space<vmem>>, vector<128x36xf32>,
    return
  }
  func.func @transform_0(%arg0: i32) -> (i32, i32) {
    %c0_i32 = arith.constant 0 : i32
    %c0_i32_0 = arith.constant 0 : i32
    %c0_i32_1 = arith.constant 0 : i32
    return %c0_i32, %c0_i32_0 : i32, i32
  }
  func.func @transform_1(%arg0: i32) -> (i32, i32) {
    %c0_i32 = arith.constant 0 : i32
    %c0_i32_0 = arith.constant 0 : i32
    %c0_i32_1 = arith.constant 0 : i32
    return %c0_i32, %c0_i32_0 : i32, i32
  }
  func.func @transform_2(%arg0: i32) -> (i32, i32) {
    %c0_i32 = arith.constant 0 : i32
    %c0_i32_0 = arith.constant 0 : i32
    return %arg0, %c0_i32 : i32, i32
  }
  func.func @transform_3(%arg0: i32) -> (i32, i32) {
    %c0_i32 = arith.constant 0 : i32
    %c0_i32_0 = arith.constant 0 : i32
    return %c0_i32, %arg0 : i32, i32
  }
  func.func @transform_4(%arg0: i32) -> (i32, i32) {
    %c0_i32 = arith.constant 0 : i32
    %c0_i32_0 = arith.constant 0 : i32
    return %arg0, %c0_i32 : i32, i32
  }
}

</mosaic_0001>

<bundles_post_ra>
// kernel: tpu_custom_call.1
= control target key start
LH: loop header
LB: loop body
LE: loop exit
PB: predicated region body
PF: predicated region fallthrough
CT: control target
= control target key end

     0   :  { %v896_v2 = vmov 0   ;;  %s1457_s0 = inlined_call_operand.vmem [shape: f32[36,1], index: 0, kind: input, shape index: {}]   ;;  %s1458_s1 = inlined_call_operand.vmem [shape: f32[36,1], index: 1, kind: input, shape index: {}]   ;;  %s1459_s2 = inlined_call_operand.vmem [shape: f32[16,3], index: 2, kind: input, shape index: {}]   ;;  %s1460_s3 = inlined_call_operand.vmem [shape: f32[3,16], index: 3, kind: input, shape index: {}]   ;;  %s1461_s4 = inlined_call_operand.hbm [shape: f32[16,39], index: 4, kind: output, shape index: {}]  }
   0x1   :  { %v83_v0 = vld [vmem:[%s1458_s1] sm:$0xff]  ;;  %853 = vset.pattern.permute.xlu1 %v896_v2  ;;  %852 = vset.pattern.permute.xlu0 %v896_v2  ;;  %v50_v3 = vld [vmem:[%s1457_s0 + $0x10] sm:$0xff]  ;;  %v49_v4 = vld [vmem:[%s1457_s0 + $0x8] sm:$0xff] }
   0x2   :  { %v48_v1 = vld [vmem:[%s1457_s0] sm:$0xff]  ;;  %90 = vperm.xlu1 %853, %v83_v0  }
   0x3   :  { %55 = vperm.xlu0 %852, %v48_v1  }
   0x4   :  { %9 = vsyncpa [#allocation3], 0  ;;  %v51_v5 = vld [vmem:[%s1457_s0 + $0x18] sm:$0xff]  ;;  %v84_v6 = vld [vmem:[%s1458_s1 + $0x8] sm:$0xff]  ;;  %vm38_vm0 = vcmask 1040384   ;;  %vm34_vm1 = vcmask 1042432  }
   0x5   :  { %v52_v7 = vld [vmem:[%s1457_s0 + $0x20] sm:$0xf]  ;;  %v85_v8 = vld [vmem:[%s1458_s1 + $0x10] sm:$0xff]  ;;  %v86_v10 = vld [vmem:[%s1458_s1 + $0x18] sm:$0xff]  ;;  %vm40_vm2 = vcmask 1043456   ;;  %vm36_vm3 = vcmask 1045504  }
   0x6   :  { %65 = vperm.xlu1 %853, %v50_v3   ;;  %v87_v9 = vld [vmem:[%s1458_s1 + $0x20] sm:$0xf]  ;;  %vm42_vm4 = vcmask 1046528   ;;  %vm44_vm5 = vcmask 1041408   ;;  %vm46_vm6 = vcmask 1044480   ;;  %s903_s18 = smov 3  }
   0x7   :  { %60 = vperm.xlu0 %852, %v49_v4   ;;  %v18_v11 = vld [vmem:[%s1460_s3] sm:$0x7]  ;;  %v897_v60 = vmov 683565275   ;;  %v898_v62 = vmov 2475754826  }
   0x8   :  { %v24_v12 = vrot.slane %v18_v11, 7  ;;  %v22_v13 = vrot.slane %v18_v11, 2  ;;  %v20_v14 = vrot.slane %v18_v11, 5  ;;  %v26_v15 = vrot.slane %v18_v11, 4 }
   0x9   :  { %v28_v18 = vrot.slane %v18_v11, 1  ;;  %v30_v21 = vrot.slane %v18_v11, 6  ;;  %v32_v26 = vrot.slane %v18_v11, 3  ;;  %v899_v1 = vmov 2131351028  }
   0xa   :  { %70 = vperm.xlu1 %853, %v51_v5   ;;  %v965_v16 = vsel %vm38_vm0, %v22_v13, %v24_v12  ;;  %v35_v19 = vsel %vm34_vm1, %v18_v11, %v20_v14  ;;  %v900_v3 = vmov 2102212464   ;;  %v901_v5 = vmov 920167782  }
   0xb   :  { %95 = vperm.xlu0 %852, %v84_v6   ;;  %v41_v20 = vsel %vm40_vm2, %v965_v16, %v26_v15  ;;  %v968_v23 = vsel %vm36_vm3, %v35_v19, %v22_v13  ;;  %v45_v27 = vsel %vm44_vm5, %v28_v18, %v30_v21  ;;  %v902_v13 = vmov 1326507024  }
   0xc   :  { %v43_v25 = vsel %vm42_vm4, %v41_v20, %v28_v18  ;;  %v47_v32 = vsel %vm46_vm6, %v45_v27, %v32_v26 }
   0xe   :  { %75 = vperm.xlu1 %853, %v52_v7  }
   0xf   :  { %100 = vperm.xlu0 %852, %v85_v8  }
  0x12   :  { %110 = vperm.xlu1 %853, %v87_v9  }
  0x13   :  { %105 = vperm.xlu0 %852, %v86_v10  }
  0x7d   :  { %v91_v22 = vpop.permute.xlu1 %90 }
  0x7e   :  { %v56_v17 = vpop.permute.xlu0 %55 }
  0x7f   :  { %v78_v28 = vmul.f32 %v56_v17, %v968_v23 }
  0x81   :  { %v66_v31 = vpop.permute.xlu1 %65  ;;  %v973_v34 = vadd.f32 %v91_v22, %v78_v28 }
  0x82   :  { %v61_v24 = vpop.permute.xlu0 %60  ;;  %v80_v37 = vmul.f32 %v66_v31, %v47_v32 }
  0x83   :  { %v79_v29 = vmul.f32 %v61_v24, %v43_v25  ;;  %v121_v41 = vand.u32 2139095040, %v973_v34 }
  0x85   :  { %v122_v48 = vshrl.u32 %v121_v41, 23  ;;  %v71_v51 = vpop.permute.xlu1 %70 }
  0x86   :  { %v96_v30 = vpop.permute.xlu0 %95 }
  0x87   :  { %v971_v33 = vadd.f32 %v96_v30, %v79_v29  ;;  %v986_v56 = vadd.s32 4294967169, %v122_v48 }
  0x89   :  { %v222_v35 = vand.u32 2147483647, %v971_v33  ;;  %v225_v36 = vand.u32 2139095040, %v971_v33  ;;  %v76_v10 = vpop.permute.xlu1 %75 }
  0x8a   :  { %v101_v38 = vpop.permute.xlu0 %100 }
  0x8b   :  { %v226_v39 = vshrl.u32 %v225_v36, 23  ;;  %v977_v40 = vadd.f32 %v101_v38, %v80_v37  ;;  %v229_v43 = vand.u32 8388607, %v222_v35 }
  0x8d   :  { %v804_v42 = vadd.s32 4294967169, %v226_v39  ;;  %v326_v44 = vand.u32 2147483647, %v977_v40  ;;  %v329_v45 = vand.u32 2139095040, %v977_v40  ;;  %v230_v49 = vor.u32 8388608, %v229_v43  ;;  %v111_v38 = vpop.permute.xlu1 %110 }
  0x8e   :  { %v81_v39 = vmul.f32 %v71_v51, %v968_v23  ;;  %v82_v43 = vmul.f32 %v76_v10, %v965_v16 }
  0x8f   :  { %v232_v46 = vadd.s32 1, %v804_v42  ;;  %v330_v47 = vshrl.u32 %v329_v45, 23  ;;  %v333_v50 = vand.u32 8388607, %v326_v44  ;;  %v988_v57 = vshll.u32 %v230_v49, 8 }
  0x90   :  { %v1026_v23 = vadd.f32 %v111_v38, %v82_v43 }
  0x91   :  { %vm233_vm7 = vcmp.gt.s32.totalorder %v232_v46, 0  ;;  %v808_v52 = vadd.s32 4294967169, %v330_v47  ;;  %v334_v58 = vor.u32 8388608, %v333_v50 }
  0x92   :  { %v234_v53 = vsel %vm233_vm7, %v232_v46, 0 }
  0x93   :  { %v235_v54 = vshrl.u32 %v234_v53, 5  ;;  %v236_v55 = vand.u32 31, %v234_v53  ;;  %v336_v0 = vadd.s32 1, %v808_v52  ;;  %v1024_v52 = vshll.u32 %v334_v58, 8 }
  0x95   :  { %v237_v59 = vsub.s32 32, %v236_v55  ;;  %v239_v61 = vshll.u32 %v897_v60, %v236_v55  ;;  %v242_v63 = vshll.u32 %v898_v62, %v236_v55  ;;  %v245_v2 = vshll.u32 %v899_v1, %v236_v55 }
  0x96   :  { %v248_v4 = vshll.u32 %v900_v3, %v236_v55  ;;  %v251_v6 = vshll.u32 %v901_v5, %v236_v55  ;;  %vm254_vm8 = vcmp.lt.s32.totalorder %v235_v54, 1  ;;  %vm255_vm9 = vcmp.lt.s32.totalorder %v235_v54, 2 }
  0x97   :  { %v240_v7 = vshrl.u32 %v898_v62, %v237_v59  ;;  %v243_v8 = vshrl.u32 %v899_v1, %v237_v59  ;;  %v246_v9 = vshrl.u32 %v900_v3, %v237_v59  ;;  %v238_v11 = vshrl.u32 %v897_v60, %v237_v59 }
  0x98   :  { %v249_v12 = vshrl.u32 %v901_v5, %v237_v59  ;;  %v252_v14 = vshrl.u32 %v902_v13, %v237_v59  ;;  %vm256_vm10 = vcmp.lt.s32.totalorder %v235_v54, 3  ;;  %vm337_vm11 = vcmp.gt.s32.totalorder %v336_v0, 0 }
  0x99   :  { %v241_v15 = vor.u32 %v240_v7, %v239_v61  ;;  %v244_v17 = vor.u32 %v243_v8, %v242_v63  ;;  %v247_v18 = vor.u32 %v246_v9, %v245_v2  ;;  %vm257_vm12 = vcmp.lt.s32.totalorder %v235_v54, 4 }
  0x9a   :  { %v250_v19 = vor.u32 %v249_v12, %v248_v4  ;;  %v253_v20 = vor.u32 %v252_v14, %v251_v6  ;;  %v338_v21 = vsel %vm337_vm11, %v336_v0, 0  ;;  %v537_v9 = vand.u32 2139095040, %v1026_v23 }
  0x9b   :  { %v258_v22 = vsel %vm254_vm8, %v238_v11, %v241_v15  ;;  %v259_v24 = vsel %vm257_vm12, %v247_v18, 2102212464  ;;  %v262_v25 = vsel %vm254_vm8, %v241_v15, %v244_v17  ;;  %v266_v26 = vsel %vm254_vm8, %v244_v17, %v247_v18 }
  0x9c   :  { %v260_v27 = vsel %vm256_vm10, %v244_v17, %v259_v24  ;;  %v263_v28 = vsel %vm257_vm12, %v250_v19, 920167782  ;;  %v267_v29 = vsel %vm257_vm12, %v253_v20, 1326507024  ;;  %v1005_v30 = vshrl.u32 %v338_v21, 5 }
  0x9d   :  { %v261_v31 = vsel %vm255_vm9, %v258_v22, %v260_v27  ;;  %v264_v32 = vsel %vm256_vm10, %v247_v18, %v263_v28  ;;  %v268_v36 = vsel %vm256_vm10, %v250_v19, %v267_v29  ;;  %v340_v37 = vand.u32 31, %v338_v21  ;;  %v106_v27 = vpop.permute.xlu0 %105 }
  0x9e   :  { %v265_v41 = vsel %vm255_vm9, %v262_v25, %v264_v32  ;;  %v269_v42 = vsel %vm255_vm9, %v266_v26, %v268_v36  ;;  %v277_v49 = vmul.u32 %v988_v57, %v261_v31  ;;  %vm358_vm13 = vcmp.lt.s32.totalorder %v1005_v30, 1 }
  0x9f   :  { %v1015_v45 = vmul.u32.u64.low %v988_v57, %v269_v42  ;;  %v1016_v46 = vmul.u32.u64.high %v988_v57, %v269_v42, %v1015_v45  ;;  %v1019_v47 = vmul.u32.u64.low %v988_v57, %v265_v41  ;;  %v1020_v48 = vmul.u32.u64.high %v988_v57, %v265_v41, %v1019_v47 }
  0xa0   :  { %v341_v50 = vsub.s32 32, %v340_v37  ;;  %v343_v51 = vshll.u32 %v897_v60, %v340_v37  ;;  %v346_v16 = vshll.u32 %v898_v62, %v340_v37  ;;  %v349_v53 = vshll.u32 %v899_v1, %v340_v37 }
  0xa1   :  { %v352_v57 = vshll.u32 %v900_v3, %v340_v37  ;;  %vm279_vm14 = vc.u32 %v1016_v46, %v1019_v47  ;;  %v280_v58 = vadd.s32 1, %v1020_v48  ;;  %v355_v63 = vshll.u32 %v901_v5, %v340_v37 }
  0xa2   :  { %v344_v54 = vshrl.u32 %v898_v62, %v341_v50  ;;  %v347_v55 = vshrl.u32 %v899_v1, %v341_v50  ;;  %v350_v59 = vshrl.u32 %v900_v3, %v341_v50  ;;  %v353_v61 = vshrl.u32 %v901_v5, %v341_v50 }
  0xa3   :  { %v356_v6 = vshrl.u32 %v902_v13, %v341_v50  ;;  %v281_v7 = vsel %vm279_vm14, %v280_v58, %v1020_v48  ;;  %vm361_vm15 = vcmp.lt.s32.totalorder %v1005_v30, 4  ;;  %v342_v10 = vshrl.u32 %v897_v60, %v341_v50 }
  0xa4   :  { %v345_v0 = vor.u32 %v344_v54, %v343_v51  ;;  %v348_v2 = vor.u32 %v347_v55, %v346_v16  ;;  %v351_v4 = vor.u32 %v350_v59, %v349_v53  ;;  %v354_v8 = vor.u32 %v353_v61, %v352_v57 }
  0xa5   :  { %v357_v11 = vor.u32 %v356_v6, %v355_v63  ;;  %vm359_vm0 = vcmp.lt.s32.totalorder %v1005_v30, 2  ;;  %vm360_vm1 = vcmp.lt.s32.totalorder %v1005_v30, 3  ;;  %v282_v18 = vadd.s32 %v281_v7, %v277_v49 }
  0xa6   :  { %v363_v12 = vsel %vm361_vm15, %v351_v4, 2102212464  ;;  %v366_v14 = vsel %vm358_vm13, %v345_v0, %v348_v2  ;;  %v367_v15 = vsel %vm361_vm15, %v354_v8, 920167782  ;;  %v370_v17 = vsel %vm358_vm13, %v348_v2, %v351_v4 }
  0xa7   :  { %v362_v19 = vsel %vm358_vm13, %v342_v10, %v345_v0  ;;  %v368_v20 = vsel %vm360_vm1, %v351_v4, %v367_v15  ;;  %v371_v21 = vsel %vm361_vm15, %v357_v11, 1326507024  ;;  %v364_v22 = vsel %vm360_vm1, %v348_v2, %v363_v12 }
  0xa8   :  { %v369_v24 = vsel %vm359_vm0, %v366_v14, %v368_v20  ;;  %v372_v25 = vsel %vm360_vm1, %v354_v8, %v371_v21  ;;  %v538_v26 = vshrl.u32 %v537_v9, 23  ;;  %v128_v28 = vadd.s32 1, %v986_v56 }
  0xa9   :  { %v373_v29 = vsel %vm359_vm0, %v370_v17, %v372_v25  ;;  %v1060_v31 = vmul.u32.u64.low %v1024_v52, %v369_v24  ;;  %v1061_v32 = vmul.u32.u64.high %v1024_v52, %v369_v24, %v1060_v31  ;;  %v283_v41 = vadd.s32 536870912, %v282_v18 }
  0xaa   :  { %v1065_v36 = vmul.u32.u64.low %v1024_v52, %v373_v29  ;;  %v1066_v37 = vmul.u32.u64.high %v1024_v52, %v373_v29, %v1065_v36  ;;  %v816_v38 = vadd.s32 4294967169, %v538_v26  ;;  %v365_v42 = vsel %vm359_vm0, %v362_v19, %v364_v22 }
  0xab   :  { %v1070_v43 = vadd.f32 %v106_v27, %v81_v39  ;;  %vm129_vm2 = vcmp.gt.s32.totalorder %v128_v28, 0  ;;  %v384_v45 = vadd.s32 1, %v1061_v32  ;;  %v381_v48 = vmul.u32 %v1024_v52, %v365_v42 }
  0xac   :  { %v544_v56 = vadd.s32 1, %v816_v38  ;;  %vm383_vm3 = vc.u32 %v1066_v37, %v1060_v31  ;;  %v534_v49 = vand.u32 2147483647, %v1026_v23  ;;  %v1077_v50 = vshrl.u32 %v283_v41, 30 }
  0xad   :  { %v385_v51 = vsel %vm383_vm3, %v384_v45, %v1061_v32  ;;  %v433_v39 = vand.u32 2139095040, %v1070_v43  ;;  %v130_v54 = vsel %vm129_vm2, %v128_v28, 0  ;;  %v118_v25 = vand.u32 2147483647, %v973_v34 }
  0xae   :  { %vm545_vm4 = vcmp.gt.s32.totalorder %v544_v56, 0  ;;  %v386_v16 = vadd.s32 %v385_v51, %v381_v48  ;;  %v541_v55 = vand.u32 8388607, %v534_v49  ;;  %v285_v59 = vshll.u32 %v1077_v50, 30 }
  0xaf   :  { %v546_v30 = vsel %vm545_vm4, %v544_v56, 0  ;;  %v434_v61 = vshrl.u32 %v433_v39, 23  ;;  %v1099_v26 = vand.u32 31, %v130_v54 }
  0xb0   :  { %v548_v53 = vand.u32 31, %v546_v30  ;;  %v387_v57 = vadd.s32 536870912, %v386_v16  ;;  %v547_v58 = vshrl.u32 %v546_v30, 5  ;;  %v542_v10 = vor.u32 8388608, %v541_v55 }
  0xb1   :  { %v1093_v15 = vsub.s32 %v282_v18, %v285_v59  ;;  %v812_v20 = vadd.s32 4294967169, %v434_v61  ;;  %v1118_v55 = vsub.s32 32, %v1099_v26 }
  0xb2   :  { %v549_v52 = vsub.s32 32, %v548_v53  ;;  %v551_v63 = vshll.u32 %v897_v60, %v548_v53  ;;  %v554_v2 = vshll.u32 %v898_v62, %v548_v53  ;;  %v560_v7 = vshll.u32 %v900_v3, %v548_v53 }
  0xb3   :  { %v557_v14 = vshll.u32 %v899_v1, %v548_v53  ;;  %v563_v19 = vshll.u32 %v901_v5, %v548_v53  ;;  %v1096_v22 = vshrl.u32 %v387_v57, 30  ;;  %vm566_vm5 = vcmp.lt.s32.totalorder %v547_v58, 1 }
  0xb4   :  { %v552_v0 = vshrl.u32 %v898_v62, %v549_v52  ;;  %v555_v4 = vshrl.u32 %v899_v1, %v549_v52  ;;  %v558_v6 = vshrl.u32 %v900_v3, %v549_v52  ;;  %v561_v8 = vshrl.u32 %v901_v5, %v549_v52 }
  0xb5   :  { %v564_v9 = vshrl.u32 %v902_v13, %v549_v52  ;;  %vm569_vm6 = vcmp.lt.s32.totalorder %v547_v58, 4  ;;  %v582_v28 = vshll.u32 %v542_v10, 8  ;;  %v288_v18 = vsub.s32 0, %v1093_v15 }
  0xb6   :  { %v553_v11 = vor.u32 %v552_v0, %v551_v63  ;;  %v556_v12 = vor.u32 %v555_v4, %v554_v2  ;;  %v562_v17 = vor.u32 %v561_v8, %v560_v7  ;;  %v559_v21 = vor.u32 %v558_v6, %v557_v14 }
  0xb7   :  { %v565_v24 = vor.u32 %v564_v9, %v563_v19  ;;  %vm568_vm7 = vcmp.lt.s32.totalorder %v547_v58, 3  ;;  %v440_v32 = vadd.s32 1, %v812_v20  ;;  %vm567_vm8 = vcmp.lt.s32.totalorder %v547_v58, 2 }
  0xb8   :  { %v574_v27 = vsel %vm566_vm5, %v553_v11, %v556_v12  ;;  %v575_v29 = vsel %vm569_vm6, %v562_v17, 920167782  ;;  %v571_v36 = vsel %vm569_vm6, %v559_v21, 2102212464  ;;  %v578_v41 = vsel %vm566_vm5, %v556_v12, %v559_v21 }
  0xb9   :  { %v576_v38 = vsel %vm568_vm7, %v559_v21, %v575_v29  ;;  %v389_v42 = vshll.u32 %v1096_v22, 30  ;;  %v550_v56 = vshrl.u32 %v897_v60, %v549_v52  ;;  %v579_v48 = vsel %vm569_vm6, %v565_v24, 1326507024 }
  0xba   :  { %v577_v45 = vsel %vm567_vm8, %v574_v27, %v576_v38  ;;  %v580_v51 = vsel %vm568_vm7, %v562_v17, %v579_v48  ;;  %v1115_v53 = vand.u32 8388607, %v118_v25  ;;  %v572_v52 = vsel %vm568_vm7, %v556_v12, %v571_v36 }
  0xbb   :  { %v1109_v30 = vmul.u32.u64.low %v582_v28, %v577_v45  ;;  %v1110_v39 = vmul.u32.u64.high %v582_v28, %v577_v45, %v1109_v30  ;;  %v570_v59 = vsel %vm566_vm5, %v550_v56, %v553_v11  ;;  %v581_v57 = vsel %vm567_vm8, %v578_v41, %v580_v51 }
  0xbc   :  { %v805_v61 = vmin.u32 %v288_v18, %v1093_v15  ;;  %v1124_v63 = vmul.u32.u64.low %v582_v28, %v581_v57  ;;  %v1125_v0 = vmul.u32.u64.high %v582_v28, %v581_v57, %v1124_v63  ;;  %v1127_v2 = vsub.s32 %v386_v16, %v389_v42 }
  0xbd   :  { %vm441_vm9 = vcmp.gt.s32.totalorder %v440_v32, 0  ;;  %v573_v4 = vsel %vm567_vm8, %v570_v59, %v572_v52  ;;  %v592_v6 = vadd.s32 1, %v1110_v39  ;;  %v145_v8 = vshrl.u32 %v901_v5, %v1118_v55 }
  0xbe   :  { %v442_v7 = vsel %vm441_vm9, %v440_v32, 0  ;;  %v126_v10 = vor.u32 8388608, %v1115_v53  ;;  %v1134_v11 = vshrl.u32 %v130_v54, 5  ;;  %v144_v12 = vshll.u32 %v900_v3, %v1099_v26 }
  0xbf   :  { %v444_v9 = vand.u32 31, %v442_v7  ;;  %v290_v14 = vclz %v805_v61  ;;  %v430_v16 = vand.u32 2147483647, %v1070_v43  ;;  %v392_v58 = vsub.s32 0, %v1127_v2 }
  0xc0   :  { %v589_v17 = vmul.u32 %v582_v28, %v573_v4  ;;  %vm591_vm10 = vc.u32 %v1125_v0, %v1109_v30  ;;  %v147_v20 = vshll.u32 %v901_v5, %v1099_v26  ;;  %v148_v54 = vshrl.u32 %v902_v13, %v1118_v55 }
  0xc1   :  { %v445_v19 = vsub.s32 32, %v444_v9  ;;  %v593_v21 = vsel %vm591_vm10, %v592_v6, %v1110_v39  ;;  %v1149_v24 = vshrl.u32 %v897_v60, %v1118_v55  ;;  %v1151_v27 = vor.u32 %v145_v8, %v144_v12 }
  0xc2   :  { %v594_v18 = vadd.s32 %v593_v21, %v589_v17  ;;  %v135_v29 = vshll.u32 %v897_v60, %v1099_v26  ;;  %v447_v32 = vshll.u32 %v897_v60, %v444_v9  ;;  %v450_v36 = vshll.u32 %v898_v62, %v444_v9 }
  0xc3   :  { %v448_v28 = vshrl.u32 %v898_v62, %v445_v19  ;;  %v451_v38 = vshrl.u32 %v899_v1, %v445_v19  ;;  %v136_v41 = vshrl.u32 %v898_v62, %v1118_v55  ;;  %v806_v42 = vadd.s32 4294967294, %v290_v14 }
  0xc4   :  { %v809_v56 = vmin.u32 %v392_v58, %v1127_v2  ;;  %v595_v45 = vadd.s32 536870912, %v594_v18  ;;  %v437_v48 = vand.u32 8388607, %v430_v16  ;;  %v443_v51 = vshrl.u32 %v442_v7, 5 }
  0xc5   :  { %v449_v39 = vor.u32 %v448_v28, %v447_v32  ;;  %v452_v59 = vor.u32 %v451_v38, %v450_v36  ;;  %v453_v52 = vshll.u32 %v899_v1, %v444_v9  ;;  %v454_v61 = vshrl.u32 %v900_v3, %v445_v19 }
  0xc6   :  { %v1165_v57 = vshrl.u32 %v595_v45, 30  ;;  %v456_v63 = vshll.u32 %v900_v3, %v444_v9  ;;  %v457_v4 = vshrl.u32 %v901_v5, %v445_v19  ;;  %v149_v6 = vor.u32 %v148_v54, %v147_v20 }
  0xc7   :  { %vm153_vm11 = vcmp.lt.s32.totalorder %v1134_v11, 4  ;;  %v459_v8 = vshll.u32 %v901_v5, %v444_v9  ;;  %v460_v12 = vshrl.u32 %v902_v13, %v445_v19  ;;  %v137_v7 = vor.u32 %v136_v41, %v135_v29 }
  0xc8   :  { %vm807_vm12 = vcmp.lt.s32.totalorder %v806_v42, 0  ;;  %v455_v14 = vor.u32 %v454_v61, %v453_v52  ;;  %v458_v58 = vor.u32 %v457_v4, %v456_v63  ;;  %v138_v17 = vshll.u32 %v898_v62, %v1099_v26 }
  0xc9   :  { %v597_v21 = vshll.u32 %v1165_v57, 30  ;;  %v438_v28 = vor.u32 8388608, %v437_v48  ;;  %v461_v32 = vor.u32 %v460_v12, %v459_v8  ;;  %vm462_vm13 = vcmp.lt.s32.totalorder %v443_v51, 1 }
  0xca   :  { %v394_v36 = vclz %v809_v56  ;;  %vm465_vm14 = vcmp.lt.s32.totalorder %v443_v51, 4  ;;  %v470_v20 = vsel %vm462_vm13, %v449_v39, %v452_v59  ;;  %v139_v5 = vshrl.u32 %v899_v1, %v1118_v55 }
  0xcb   :  { %v446_v13 = vshrl.u32 %v897_v60, %v445_v19  ;;  %vm464_vm15 = vcmp.lt.s32.totalorder %v443_v51, 3  ;;  %v471_v9 = vsel %vm465_vm14, %v458_v58, 920167782  ;;  %v474_v54 = vsel %vm462_vm13, %v452_v59, %v455_v14 }
  0xcc   :  { %vm463_vm0 = vcmp.lt.s32.totalorder %v443_v51, 2  ;;  %v467_v62 = vsel %vm465_vm14, %v455_v14, 2102212464  ;;  %v472_v29 = vsel %vm464_vm15, %v455_v14, %v471_v9  ;;  %v475_v38 = vsel %vm465_vm14, %v461_v32, 1326507024 }
  0xcd   :  { %v1181_v41 = vsub.s32 %v594_v18, %v597_v21  ;;  %v473_v56 = vsel %vm463_vm0, %v470_v20, %v472_v29  ;;  %v476_v45 = vsel %vm464_vm15, %v458_v58, %v475_v38  ;;  %v478_v48 = vshll.u32 %v438_v28, 8 }
  0xce   :  { %v466_v52 = vsel %vm462_vm13, %v446_v13, %v449_v39  ;;  %v477_v61 = vsel %vm463_vm0, %v474_v54, %v476_v45  ;;  %v140_v63 = vor.u32 %v139_v5, %v138_v17  ;;  %v141_v60 = vshll.u32 %v899_v1, %v1099_v26 }
  0xcf   :  { %v468_v19 = vsel %vm464_vm15, %v452_v59, %v467_v62  ;;  %v1188_v4 = vmul.u32.u64.low %v478_v48, %v477_v61  ;;  %v1189_v8 = vmul.u32.u64.high %v478_v48, %v477_v61, %v1188_v4  ;;  %v142_v18 = vshrl.u32 %v900_v3, %v1118_v55 }
  0xd0   :  { %v159_v12 = vsel %vm153_vm11, %v1151_v27, 920167782  ;;  %v163_v39 = vsel %vm153_vm11, %v149_v6, 1326507024  ;;  %v1198_v14 = vmul.u32.u64.low %v478_v48, %v473_v56  ;;  %v1199_v58 = vmul.u32.u64.high %v478_v48, %v473_v56, %v1198_v14 }
  0xd1   :  { %v293_v1 = vsel %vm807_vm12, 0, %v806_v42  ;;  %v600_v26 = vsub.s32 0, %v1181_v41  ;;  %v143_v59 = vor.u32 %v142_v18, %v141_v60  ;;  %vm150_vm1 = vcmp.lt.s32.totalorder %v1134_v11, 1 }
  0xd2   :  { %v810_v17 = vadd.s32 4294967294, %v394_v36  ;;  %v469_v3 = vsel %vm463_vm0, %v466_v52, %v468_v19  ;;  %vm152_vm2 = vcmp.lt.s32.totalorder %v1134_v11, 3  ;;  %v158_v55 = vsel %vm150_vm1, %v137_v7, %v140_v63 }
  0xd3   :  { %vm487_vm3 = vc.u32 %v1189_v8, %v1198_v14  ;;  %vm151_vm4 = vcmp.lt.s32.totalorder %v1134_v11, 2  ;;  %v155_v42 = vsel %vm153_vm11, %v143_v59, 2102212464  ;;  %v160_v6 = vsel %vm152_vm2, %v143_v59, %v159_v12 }
  0xd4   :  { %v298_v21 = vsub.s32 4294967266, %v293_v1  ;;  %v488_v51 = vadd.s32 1, %v1199_v58  ;;  %v161_v28 = vsel %vm151_vm4, %v158_v55, %v160_v6  ;;  %v164_v32 = vsel %vm152_vm2, %v1151_v27, %v163_v39 }
  0xd5   :  { %v817_v36 = vmin.u32 %v600_v26, %v1181_v41  ;;  %v485_v20 = vmul.u32 %v478_v48, %v469_v3  ;;  %v162_v5 = vsel %vm150_vm1, %v140_v63, %v143_v59  ;;  %v166_v13 = vshll.u32 %v126_v10, 8 }
  0xd6   :  { %vm811_vm5 = vcmp.lt.s32.totalorder %v810_v17, 0  ;;  %v489_v9 = vsel %vm487_vm3, %v488_v51, %v1199_v58  ;;  %v154_v54 = vsel %vm150_vm1, %v1149_v24, %v137_v7  ;;  %v156_v62 = vsel %vm152_vm2, %v140_v63, %v155_v42 }
  0xd7   :  { %v490_v27 = vadd.s32 %v489_v9, %v485_v20  ;;  %v165_v29 = vsel %vm151_vm4, %v162_v5, %v164_v32  ;;  %v1235_v38 = vmul.u32.u64.low %v166_v13, %v161_v28  ;;  %v1236_v56 = vmul.u32.u64.high %v166_v13, %v161_v28, %v1235_v38 }
  0xd8   :  { %v299_v53 = vadd.s32 127, %v298_v21  ;;  %v1239_v10 = vmul.u32.u64.low %v166_v13, %v165_v29  ;;  %v1240_v45 = vmul.u32.u64.high %v166_v13, %v165_v29, %v1239_v10  ;;  %v602_v48 = vclz %v817_v36 }
  0xd9   :  { %v491_v52 = vadd.s32 536870912, %v490_v27  ;;  %v157_v24 = vsel %vm151_vm4, %v154_v54, %v156_v62  ;;  %v397_v7 = vsel %vm811_vm5, 0, %v810_v17  ;;  %v294_v61 = vsub.s32 32, %v293_v1 }
  0xda   :  { %v176_v60 = vadd.s32 1, %v1236_v56  ;;  %v278_v19 = vadd.s32 %v1019_v47, %v1016_v46  ;;  %v300_v4 = vshll.u32 %v299_v53, 23  ;;  %v173_v18 = vmul.u32 %v166_v13, %v157_v24 }
  0xdb   :  { %v1244_v63 = vshrl.u32 %v491_v52, 30  ;;  %vm175_vm6 = vc.u32 %v1240_v45, %v1235_v38  ;;  %v402_v12 = vsub.s32 4294967266, %v397_v7  ;;  %v818_v39 = vadd.s32 4294967294, %v602_v48 }
  0xdc   :  { %v177_v11 = vsel %vm175_vm6, %v176_v60, %v1236_v56  ;;  %v296_v59 = vshrl.u32 %v278_v19, %v294_v61  ;;  %v295_v3 = vshll.u32 %v1093_v15, %v293_v1  ;;  %v301_v42 = vor.u32 4788187, %v300_v4 }
  0xdd   :  { %v493_v58 = vshll.u32 %v1244_v63, 30  ;;  %v178_v26 = vadd.s32 %v177_v11, %v173_v18  ;;  %v403_v6 = vadd.s32 127, %v402_v12  ;;  %vm819_vm7 = vcmp.lt.s32.totalorder %v818_v39, 0 }
  0xde   :  { %v398_v47 = vsub.s32 32, %v397_v7  ;;  %v297_v51 = vor.u32 %v296_v59, %v295_v3  ;;  %v382_v32 = vadd.s32 %v1060_v31, %v1066_v37  ;;  %v605_v36 = vsel %vm819_vm7, 0, %v818_v39 }
  0xdf   :  { %v494_v17 = vsub.s32 %v490_v27, %v493_v58  ;;  %v179_v55 = vadd.s32 536870912, %v178_v26  ;;  %v302_v5 = vand.u32 2147483647, %v301_v42  ;;  %v404_v13 = vshll.u32 %v403_v6, 23 }
  0xe0   :  { %v400_v15 = vshrl.u32 %v382_v32, %v398_v47  ;;  %v304_v54 = vcvt.s32.f32 %v297_v51  ;;  %v610_v62 = vsub.s32 4294967266, %v605_v36  ;;  %v399_v29 = vshll.u32 %v1127_v2, %v397_v7 }
  0xe1   :  { %v496_v46 = vsub.s32 0, %v494_v17  ;;  %v1254_v21 = vshrl.u32 %v179_v55, 30  ;;  %v405_v10 = vor.u32 4788187, %v404_v13  ;;  %v486_v24 = vadd.s32 %v1198_v14, %v1189_v8 }
  0xe2   :  { %v305_v53 = vmul.f32 %v304_v54, %v302_v5  ;;  %v401_v48 = vor.u32 %v400_v15, %v399_v29  ;;  %v611_v37 = vadd.s32 127, %v610_v62  ;;  %v606_v58 = vsub.s32 32, %v605_v36 }
  0xe3   :  { %v813_v28 = vmin.u32 %v496_v46, %v494_v17  ;;  %v181_v20 = vshll.u32 %v1254_v21, 30  ;;  %v406_v18 = vand.u32 2147483647, %v405_v10  ;;  %vm224_vm9 = vcmp.lt.s32.totalorder %v971_v33, 0 }
  0xe4   :  { %v306_v4 = vxor.u32 2147483648, %v305_v53  ;;  %v408_v11 = vcvt.s32.f32 %v401_v48  ;;  %v590_v3 = vadd.s32 %v1109_v30, %v1125_v0  ;;  %vm1271_vm11 = vcmp.le.f32.partialorder %v222_v35, 0.7853982 }
  0xe5   :  { %v498_v9 = vclz %v813_v28  ;;  %v182_v1 = vsub.s32 %v178_v26, %v181_v20  ;;  %v612_v26 = vshll.u32 %v611_v37, 23  ;;  %v607_v30 = vshll.u32 %v1181_v41, %v605_v36 }
  0xe6   :  { %v307_v8 = vsel %vm224_vm9, %v306_v4, %v305_v53  ;;  %v409_v14 = vmul.f32 %v408_v11, %v406_v18  ;;  %v608_v46 = vshrl.u32 %v590_v3, %v606_v58  ;;  %vm328_vm12 = vcmp.lt.s32.totalorder %v977_v40, 0 }
  0xe7   :  { %v814_v27 = vadd.s32 4294967294, %v498_v9  ;;  %v184_v56 = vsub.s32 0, %v182_v1  ;;  %v613_v0 = vor.u32 4788187, %v612_v26  ;;  %vm1284_vm13 = vcmp.le.f32.partialorder %v326_v44, 0.7853982 }
  0xe8   :  { %v609_v15 = vor.u32 %v608_v46, %v607_v30  ;;  %vm432_vm14 = vcmp.lt.s32.totalorder %v1070_v43, 0  ;;  %vm1297_vm15 = vcmp.le.f32.partialorder %v430_v16, 0.7853982  ;;  %vm1303_vm0 = vcmp.le.f32.partialorder %v118_v25, 0.7853982  ;;  %v674_v26 = vld [vmem:[%s1459_s2 + $0x20] sm:$0xff] }
  0xe9   :  { %vm815_vm8 = vcmp.lt.s32.totalorder %v814_v27, 0  ;;  %v801_v31 = vmin.u32 %v184_v56, %v182_v1  ;;  %vm120_vm1 = vcmp.lt.s32.totalorder %v973_v34, 0  ;;  %vm536_vm2 = vcmp.lt.s32.totalorder %v1026_v23, 0 }
  0xea   :  { %v501_v52 = vsel %vm815_vm8, 0, %v814_v27  ;;  %v614_v27 = vand.u32 2147483647, %v613_v0  ;;  %v616_v36 = vcvt.s32.f32 %v609_v15  ;;  %vm1330_vm3 = vcmp.le.f32.partialorder %v534_v49, 0.7853982 }
  0xeb   :  { %v502_v61 = vsub.s32 32, %v501_v52  ;;  %v506_v60 = vsub.s32 4294967266, %v501_v52  ;;  %v186_v19 = vclz %v801_v31  ;;  %v503_v2 = vshll.u32 %v494_v17, %v501_v52 }
  0xec   :  { %v174_v17 = vadd.s32 %v1235_v38, %v1240_v45  ;;  %v310_v38 = vsel %vm1271_vm11, %v971_v33, %v307_v8  ;;  %v410_v45 = vxor.u32 2147483648, %v409_v14  ;;  %v617_v48 = vmul.f32 %v616_v36, %v614_v27 }
  0xed   :  { %v504_v12 = vshrl.u32 %v486_v24, %v502_v61  ;;  %v507_v39 = vadd.s32 127, %v506_v60  ;;  %v802_v7 = vadd.s32 4294967294, %v186_v19  ;;  %854 = vcosq.f32 %v310_v38 }
  0xee   :  { %v411_v41 = vsel %vm328_vm12, %v410_v45, %v409_v14  ;;  %856 = vsinq.f32 %v310_v38  ;;  %v308_v31 = vsub.s32 4, %v1077_v50  ;;  %v204_v19 = vsub.s32 4, %v1254_v21 }
  0xef   :  { %v508_v59 = vshll.u32 %v507_v39, 23  ;;  %v505_v55 = vor.u32 %v504_v12, %v503_v2  ;;  %vm803_vm10 = vcmp.lt.s32.totalorder %v802_v7, 0  ;;  %v414_v37 = vsel %vm1284_vm13, %v977_v40, %v411_v41 }
  0xf0   :  { %v189_v6 = vsel %vm803_vm10, 0, %v802_v7  ;;  %858 = vsinq.f32 %v414_v37  ;;  %v618_v4 = vxor.u32 2147483648, %v617_v48  ;;  %v309_v16 = vsel %vm224_vm9, %v308_v31, %v1077_v50 }
  0xf1   :  { %v509_v42 = vor.u32 4788187, %v508_v59  ;;  %v190_v47 = vsub.s32 32, %v189_v6  ;;  %v194_v51 = vsub.s32 4294967266, %v189_v6  ;;  %v512_v20 = vcvt.s32.f32 %v505_v55 }
  0xf2   :  { %v191_v5 = vshll.u32 %v182_v1, %v189_v6  ;;  %860 = vcosq.f32 %v414_v37  ;;  %v412_v39 = vsub.s32 4, %v1096_v22  ;;  %v205_v58 = vsel %vm120_vm1, %v204_v19, %v1254_v21 }
  0xf3   :  { %v510_v32 = vand.u32 2147483647, %v509_v42  ;;  %v192_v13 = vshrl.u32 %v174_v17, %v190_v47  ;;  %v195_v9 = vadd.s32 127, %v194_v51  ;;  %v311_v50 = vsel %vm1271_vm11, 0, %v309_v16 }
  0xf4   :  { %v619_v2 = vsel %vm536_vm2, %v618_v4, %v617_v48  ;;  %v413_v7 = vsel %vm328_vm12, %v412_v39, %v1096_v22  ;;  %v207_v21 = vsel %vm1303_vm0, 0, %v205_v58  ;;  %v315_v59 = vadd.s32 3, %v311_v50 }
  0xf5   :  { %v513_v54 = vmul.f32 %v512_v20, %v510_v32  ;;  %v193_v62 = vor.u32 %v192_v13, %v191_v5  ;;  %v196_v35 = vshll.u32 %v195_v9, 23  ;;  %v516_v3 = vsub.s32 4, %v1244_v63 }
  0xf6   :  { %v622_v55 = vsel %vm1330_vm3, %v1026_v23, %v619_v2  ;;  %v415_v22 = vsel %vm1284_vm13, 0, %v413_v7  ;;  %v211_v14 = vadd.s32 3, %v207_v21  ;;  %v316_v49 = vand.u32 3, %v315_v59  ;;  %v670_v2 = vld [vmem:[%s1459_s2] sm:$0xff]  ;;  %v672_v7 = vld [vmem:[%s1459_s2 + $0x10] sm:$0xff]  ;;  %v675_v59 = vld [vmem:[%s1459_s2 + $0x28] sm:$0xff] }
  0xf7   :  { %v197_v29 = vor.u32 4788187, %v196_v35  ;;  %v514_v1 = vxor.u32 2147483648, %v513_v54  ;;  %v200_v53 = vcvt.s32.f32 %v193_v62  ;;  %v517_v42 = vsel %vm432_vm14, %v516_v3, %v1244_v63 }
  0xf8   :  { %v419_v17 = vadd.s32 3, %v415_v22  ;;  %v620_v47 = vsub.s32 4, %v1165_v57  ;;  %v212_v28 = vand.u32 3, %v211_v14  ;;  %v519_v30 = vsel %vm1297_vm15, 0, %v517_v42  ;;  %v677_v22 = vld [vmem:[%s1459_s2 + $0x38] sm:$0xff] }
  0xf9   :  { %v198_v56 = vand.u32 2147483647, %v197_v29  ;;  %v515_v24 = vsel %vm432_vm14, %v514_v1, %v513_v54  ;;  %vm318_vm4 = vcmp.eq.s32.totalorder %v316_v49, 0  ;;  %vm321_vm5 = vcmp.eq.s32.totalorder %v316_v49, 2 }
  0xfa   :  { %v518_v12 = vsel %vm1297_vm15, %v1070_v43, %v515_v24  ;;  %v855_v11 = vpop.eup %854  ;;  %v420_v13 = vand.u32 3, %v419_v17  ;;  %v523_v45 = vadd.s32 3, %v519_v30  ;;  %v621_v15 = vsel %vm536_vm2, %v620_v47, %v1165_v57  ;;  %v680_v17 = vld [vmem:[%s1459_s2 + $0x50] sm:$0xff]  ;;  %v682_v30 = vld [vmem:[%s1459_s2 + $0x60] sm:$0xff] }
  0xfb   :  { %v201_v52 = vmul.f32 %v200_v53, %v198_v56  ;;  %v857_v8 = vpop.eup %856  ;;  %v322_v46 = vxor.u32 2147483648, %v855_v11  ;;  %vm217_vm6 = vcmp.eq.s32.totalorder %v212_v28, 2  ;;  %vm317_vm7 = vcmp.lt.s32.totalorder %v316_v49, 2  ;;  %v678_v49 = vld [vmem:[%s1459_s2 + $0x40] sm:$0xff] }
  0xfc   :  { %v319_v6 = vxor.u32 2147483648, %v857_v8  ;;  %vm210_vm8 = vweird.f32 %v973_v34  ;;  %vm214_vm9 = vcmp.eq.s32.totalorder %v212_v28, 0  ;;  %vm213_vm10 = vcmp.lt.s32.totalorder %v212_v28, 2 }
  0xfd   :  { %v202_v61 = vxor.u32 2147483648, %v201_v52  ;;  %v859_v51 = vpop.eup %858  ;;  %v323_v5 = vsel %vm321_vm5, %v322_v46, %v857_v8  ;;  %vm422_vm11 = vcmp.eq.s32.totalorder %v420_v13, 0  ;;  %v623_v1 = vsel %vm1330_vm3, 0, %v621_v15 }
  0xfe   :  { %v320_v20 = vsel %vm318_vm4, %v855_v11, %v319_v6  ;;  %v423_v38 = vxor.u32 2147483648, %v859_v51  ;;  %vm425_vm12 = vcmp.eq.s32.totalorder %v420_v13, 2  ;;  %v524_v57 = vand.u32 3, %v523_v45  ;;  %v679_v6 = vld [vmem:[%s1459_s2 + $0x48] sm:$0xff] }
  0xff   :  { %v203_v18 = vsel %vm120_vm1, %v202_v61, %v201_v52  ;;  %v861_v0 = vpop.eup %860  ;;  %v324_v41 = vsel %vm317_vm7, %v320_v20, %v323_v5  ;;  %vm314_vm13 = vweird.f32 %v971_v33  ;;  %vm421_vm14 = vcmp.lt.s32.totalorder %v420_v13, 2  ;;  %v684_v5 = vld [vmem:[%s1459_s2 + $0x70] sm:$0xff] }
 0x100   :  { %v206_v25 = vsel %vm1303_vm0, %v973_v34, %v203_v18  ;;  %v426_v35 = vxor.u32 2147483648, %v861_v0  ;;  %v424_v53 = vsel %vm422_vm11, %v861_v0, %v423_v38  ;;  %v627_v34 = vadd.s32 3, %v623_v1 }
 0x101   :  { %862 = vcosq.f32 %v206_v25  ;;  %v325_v24 = vsel %vm314_vm13, nan, %v324_v41  ;;  %vm526_vm15 = vcmp.eq.s32.totalorder %v524_v57, 0  ;;  %vm529_vm0 = vcmp.eq.s32.totalorder %v524_v57, 2 }
 0x102   :  { %864 = vsinq.f32 %v206_v25  ;;  %v427_v48 = vsel %vm425_vm12, %v426_v35, %v859_v51  ;;  %vm418_vm1 = vweird.f32 %v977_v40  ;;  %v628_v4 = vand.u32 3, %v627_v34  ;;  %v681_v51 = vld [vmem:[%s1459_s2 + $0x58] sm:$0xff] }
 0x103   :  { %866 = vcosq.f32 %v518_v12  ;;  %v428_v44 = vsel %vm421_vm14, %v424_v53, %v427_v48  ;;  %vm525_vm2 = vcmp.lt.s32.totalorder %v524_v57, 2  ;;  %vm522_vm3 = vweird.f32 %v1070_v43  ;;  %v671_v43 = vld [vmem:[%s1459_s2 + $0x8] sm:$0xff] }
 0x104   :  { %868 = vsinq.f32 %v518_v12  ;;  %v429_v18 = vsel %vm418_vm1, nan, %v428_v44  ;;  %vm630_vm4 = vcmp.eq.s32.totalorder %v628_v4, 0  ;;  %vm633_vm5 = vcmp.eq.s32.totalorder %v628_v4, 2 }
 0x105   :  { %870 = vcosq.f32 %v622_v55  ;;  %vm626_vm7 = vweird.f32 %v1026_v23  ;;  %v673_v23 = vld [vmem:[%s1459_s2 + $0x18] sm:$0xff] }
 0x106   :  { %872 = vsinq.f32 %v622_v55  ;;  %v676_v55 = vld [vmem:[%s1459_s2 + $0x30] sm:$0xff] }
 0x10e   :  { %v863_v32 = vpop.eup %862 }
 0x10f   :  { %v865_v9 = vpop.eup %864  ;;  %v218_v63 = vxor.u32 2147483648, %v863_v32 }
 0x110   :  { %v867_v54 = vpop.eup %866  ;;  %v215_v62 = vxor.u32 2147483648, %v865_v9 }
 0x111   :  { %v869_v27 = vpop.eup %868  ;;  %v219_v29 = vsel %vm217_vm6, %v218_v63, %v865_v9  ;;  %v530_v31 = vxor.u32 2147483648, %v867_v54  ;;  %vm629_vm6 = vcmp.lt.s32.totalorder %v628_v4, 2  ;;  %v685_v9 = vld [vmem:[%s1459_s2 + $0x78] sm:$0xff] }
 0x112   :  { %v216_v36 = vsel %vm214_vm9, %v863_v32, %v215_v62  ;;  %v527_v52 = vxor.u32 2147483648, %v869_v27  ;;  %v871_v37 = vpop.eup %870  ;;  %v683_v32 = vld [vmem:[%s1459_s2 + $0x68] sm:$0xff]  ;;  %vm767_vm9 = vcmask 318488  }
 0x113   :  { %v220_v56 = vsel %vm213_vm10, %v216_v36, %v219_v29  ;;  %v873_v61 = vpop.eup %872  ;;  %v531_v19 = vsel %vm529_vm0, %v530_v31, %v869_v27  ;;  %v634_v12 = vxor.u32 2147483648, %v871_v37 }
 0x114   :  { %v221_v10 = vsel %vm210_vm8, nan, %v220_v56  ;;  %v528_v60 = vsel %vm526_vm15, %v867_v54, %v527_v52  ;;  %v631_v16 = vxor.u32 2147483648, %v873_v61  ;;  %vm686_vm8 = vcmask 23552  }
 0x115   :  { %638 = vxpose.xlu0.b32.start [1/5] (short) %v221_v10, 128  ;;  %v532_v25 = vsel %vm525_vm2, %v528_v60, %v531_v19  ;;  %v635_v58 = vsel %vm633_vm5, %v634_v12, %v873_v61  ;;  %687 = vst.msk [vmem:[#allocation2] sm:$0xff] %vm686_vm8, %v670_v2  ;;  %688 = vst.msk [vmem:[#allocation2 + $0x8] sm:$0xff] %vm686_vm8, %v671_v43 }
 0x116   :  { %v533_v33 = vsel %vm522_vm3, nan, %v532_v25  ;;  %v632_v39 = vsel %vm630_vm4, %v871_v37, %v631_v16  ;;  %689 = vst.msk [vmem:[#allocation2 + $0x10] sm:$0xff] %vm686_vm8, %v672_v7  ;;  %690 = vst.msk [vmem:[#allocation2 + $0x18] sm:$0xff] %vm686_vm8, %v673_v23 }
 0x117   :  { %v636_v50 = vsel %vm629_vm6, %v632_v39, %v635_v58  ;;  %691 = vst.msk [vmem:[#allocation2 + $0x20] sm:$0xff] %vm686_vm8, %v674_v26  ;;  %692 = vst.msk [vmem:[#allocation2 + $0x28] sm:$0xff] %vm686_vm8, %v675_v59 }
 0x118   :  { %v637_v40 = vsel %vm626_vm7, nan, %v636_v50  ;;  %693 = vst.msk [vmem:[#allocation2 + $0x30] sm:$0xff] %vm686_vm8, %v676_v55  ;;  %694 = vst.msk [vmem:[#allocation2 + $0x38] sm:$0xff] %vm686_vm8, %v677_v22 }
 0x119   :  { %639 = vxpose.xlu0.b32.cont [2/5] (short) %v325_v24, 128  ;;  %695 = vst.msk [vmem:[#allocation2 + $0x40] sm:$0xff] %vm686_vm8, %v678_v49  ;;  %696 = vst.msk [vmem:[#allocation2 + $0x48] sm:$0xff] %vm686_vm8, %v679_v6 }
 0x11a   :  { %697 = vst.msk [vmem:[#allocation2 + $0x50] sm:$0xff] %vm686_vm8, %v680_v17  ;;  %698 = vst.msk [vmem:[#allocation2 + $0x58] sm:$0xff] %vm686_vm8, %v681_v51 }
 0x11b   :  { %699 = vst.msk [vmem:[#allocation2 + $0x60] sm:$0xff] %vm686_vm8, %v682_v30  ;;  %700 = vst.msk [vmem:[#allocation2 + $0x68] sm:$0xff] %vm686_vm8, %v683_v32 }
 0x11c   :  { %701 = vst.msk [vmem:[#allocation2 + $0x70] sm:$0xff] %vm686_vm8, %v684_v5  ;;  %702 = vst.msk [vmem:[#allocation2 + $0x78] sm:$0xff] %vm686_vm8, %v685_v9 }
 0x11d   :  { %640 = vxpose.xlu0.b32.cont [3/5] (short) %v429_v18, 128 }
 0x121   :  { %641 = vxpose.xlu0.b32.cont [4/5] (short) %v533_v33, 128 }
 0x125   :  { %642 = vxpose.xlu0.b32.end [5/5] (short) %v637_v40, 128 }
 0x191   :  { %v654_v11 = vpop.trf.xlu0 }
 0x192   :  { %719 = vrot.lane.b32.xlu1 %v654_v11, %s903_s18 }
 0x195   :  { %v655_v21 = vpop.trf.xlu0 }
 0x196   :  { %721 = vrot.lane.b32.xlu1 %v655_v21, %s903_s18 }
 0x199   :  { %v656_v3 = vpop.trf.xlu0 }
 0x19a   :  { %723 = vrot.lane.b32.xlu1 %v656_v3, %s903_s18 }
 0x19d   :  { %v657_v8 = vpop.trf.xlu0 }
 0x19e   :  { %725 = vrot.lane.b32.xlu1 %v657_v8, %s903_s18 }
 0x1a1   :  { %v658_v14 = vpop.trf.xlu0 }
 0x1a2   :  { %727 = vrot.lane.b32.xlu1 %v658_v14, %s903_s18 }
 0x1a5   :  { %v659_v42 = vpop.trf.xlu0 }
 0x1a6   :  { %729 = vrot.lane.b32.xlu1 %v659_v42, %s903_s18 }
 0x1a9   :  { %v660_v46 = vpop.trf.xlu0 }
 0x1aa   :  { %731 = vrot.lane.b32.xlu1 %v660_v46, %s903_s18 }
 0x1ad   :  { %v661_v47 = vpop.trf.xlu0 }
 0x1ae   :  { %733 = vrot.lane.b32.xlu1 %v661_v47, %s903_s18 }
 0x1b1   :  { %v662_v28 = vpop.trf.xlu0 }
 0x1b2   :  { %735 = vrot.lane.b32.xlu1 %v662_v28, %s903_s18 }
 0x1b5   :  { %v663_v0 = vpop.trf.xlu0 }
 0x1b6   :  { %737 = vrot.lane.b32.xlu1 %v663_v0, %s903_s18 }
 0x1b9   :  { %v664_v20 = vpop.trf.xlu0 }
 0x1ba   :  { %739 = vrot.lane.b32.xlu1 %v664_v20, %s903_s18 }
 0x1bd   :  { %v665_v13 = vpop.trf.xlu0 }
 0x1be   :  { %741 = vrot.lane.b32.xlu1 %v665_v13, %s903_s18 }
 0x1c1   :  { %v666_v63 = vpop.trf.xlu0 }
 0x1c2   :  { %743 = vrot.lane.b32.xlu0 %v666_v63, %s903_s18 }
 0x1c5   :  { %v667_v38 = vpop.trf.xlu0 }
 0x1c6   :  { %745 = vrot.lane.b32.xlu1 %v667_v38, %s903_s18 }
 0x1c9   :  { %v668_v45 = vpop.trf.xlu0 }
 0x1ca   :  { %747 = vrot.lane.b32.xlu1 %v668_v45, %s903_s18 }
 0x1cd   :  { %v669_v15 = vpop.trf.xlu0 }
 0x1ce   :  { %749 = vrot.lane.b32.xlu1 %v669_v15, %s903_s18 }
 0x204   :  { %v720_v54 = vpop.permute.xlu1 %719 }
 0x205   :  { %768 = vst.msk [vmem:[#allocation2] sm:$0xff] %vm767_vm9, %v720_v54 }
 0x208   :  { %v722_v62 = vpop.permute.xlu1 %721 }
 0x209   :  { %769 = vst.msk [vmem:[#allocation2 + $0x8] sm:$0xff] %vm767_vm9, %v722_v62 }
 0x20c   :  { %v724_v35 = vpop.permute.xlu1 %723 }
 0x20d   :  { %770 = vst.msk [vmem:[#allocation2 + $0x10] sm:$0xff] %vm767_vm9, %v724_v35 }
 0x210   :  { %v726_v27 = vpop.permute.xlu1 %725 }
 0x211   :  { %771 = vst.msk [vmem:[#allocation2 + $0x18] sm:$0xff] %vm767_vm9, %v726_v27 }
 0x214   :  { %v728_v29 = vpop.permute.xlu1 %727 }
 0x215   :  { %772 = vst.msk [vmem:[#allocation2 + $0x20] sm:$0xff] %vm767_vm9, %v728_v29 }
 0x218   :  { %v730_v41 = vpop.permute.xlu1 %729 }
 0x219   :  { %773 = vst.msk [vmem:[#allocation2 + $0x28] sm:$0xff] %vm767_vm9, %v730_v41 }
 0x21c   :  { %v732_v36 = vpop.permute.xlu1 %731 }
 0x21d   :  { %774 = vst.msk [vmem:[#allocation2 + $0x30] sm:$0xff] %vm767_vm9, %v732_v36 }
 0x220   :  { %v734_v1 = vpop.permute.xlu1 %733 }
 0x221   :  { %775 = vst.msk [vmem:[#allocation2 + $0x38] sm:$0xff] %vm767_vm9, %v734_v1 }
 0x224   :  { %v736_v56 = vpop.permute.xlu1 %735 }
 0x225   :  { %776 = vst.msk [vmem:[#allocation2 + $0x40] sm:$0xff] %vm767_vm9, %v736_v56 }
 0x228   :  { %v738_v53 = vpop.permute.xlu1 %737 }
 0x229   :  { %777 = vst.msk [vmem:[#allocation2 + $0x48] sm:$0xff] %vm767_vm9, %v738_v53 }
 0x22c   :  { %v740_v57 = vpop.permute.xlu1 %739 }
 0x22d   :  { %778 = vst.msk [vmem:[#allocation2 + $0x50] sm:$0xff] %vm767_vm9, %v740_v57 }
 0x230   :  { %v742_v10 = vpop.permute.xlu1 %741 }
 0x231   :  { %779 = vst.msk [vmem:[#allocation2 + $0x58] sm:$0xff] %vm767_vm9, %v742_v10 }
 0x234   :  { %v744_v48 = vpop.permute.xlu0 %743 }
 0x235   :  { %780 = vst.msk [vmem:[#allocation2 + $0x60] sm:$0xff] %vm767_vm9, %v744_v48 }
 0x238   :  { %v746_v52 = vpop.permute.xlu1 %745 }
 0x239   :  { %781 = vst.msk [vmem:[#allocation2 + $0x68] sm:$0xff] %vm767_vm9, %v746_v52 }
 0x23c   :  { %v748_v31 = vpop.permute.xlu1 %747 }
 0x23d   :  { %782 = vst.msk [vmem:[#allocation2 + $0x70] sm:$0xff] %vm767_vm9, %v748_v31 }
 0x240   :  { %v750_v34 = vpop.permute.xlu1 %749 }
 0x241   :  { %783 = vst.msk [vmem:[#allocation2 + $0x78] sm:$0xff] %vm767_vm9, %v750_v34 }
 0x242   :  { %788 = vsyncadd [#allocation3], 1792  ;;  %s904_s2 = smov [#allocation2]  }
 0x243   :  { %s789_s12 = sshll.u32 %s904_s2, 4  ;;  %s790_s12 = int_to_ptr.vmem [resolvable:$true] %s789_s12 }
 0x244   :  { %s874_s13 = scalar_lea.vmem %s790_s12, 256  ;;  %s878_s14 = scalar_lea.vmem %s790_s12, 2048 }
 0x245   :  { %p875_p0 = scmp.ne.s32.totalorder %s790_s12, %s874_s13  ;;  %p879_p1 = scmp.lt.s32.totalorder %s790_s12, %s790_s12 }
 0x246   :  { %p880_p2 = scmp.lt.s32.totalorder %s878_s14, %s874_s13 }
 0x248   :  { %p881_p3 = por %p880_p2, %p879_p1 }
 0x24a   :  { %p882_p4 = pnand %p881_p3, %p875_p0 }
 0x24c   :  { %885 = shalt.err (!%p882_p4)
}
 0x24d   :  { %s905_s15 = smov 128   ;;  %s906_s16 = smov 8  }
 0x24e   :  { %795 = dma.vmem_to_hbm [thread:$0]  %s790_s12, 256, %s1461_s4, [#allocation3], %s905_s15, %s905_s15, %s906_s16  }
 0x24f   :  { %894 = dma.done.wait [#allocation3], 2048  }
 0x250   :  { %895 = vsyncadd [#allocation3], 4294965248 }
 0x251   :  { %799 = vsyncpa [#allocation3], 1 }

</bundles_post_ra>
